<compile_context>
chip_gen: v7x
topology: tpu7x:2x2x1
jax: 0.10.0
libtpu: 0.0.40
codegen_flags: <defaults>
</compile_context>

<pallas_src>
import functools

import jax
import jax.numpy as jnp
from jax import lax
from jax.experimental import pallas as pl
from jax.experimental.pallas import tpu as pltpu

_LANES = 128


def _round_up(n, m):
    return ((n + m - 1) // m) * m


def _cdiv(a, b):
    return (a + b - 1) // b


def _vmem_budget_and_tile_target():
    """Generation-aware scoped-VMEM budget and per-tile byte target."""
    try:
        vmem = int(pltpu.get_tpu_info().vmem_capacity_bytes)
    except Exception:  # interpret mode / very old runtimes
        vmem = 64 * 1024 * 1024
    budget = (vmem * 3) // 4
    # 64 MiB VMEM => v7x-class chip (fast HBM): larger tiles amortize the
    # ~0.35us per-grid-step overhead; otherwise 4 MiB is already near roofline.
    target_tile = 6 * 1024 * 1024 if vmem <= 64 * 1024 * 1024 else 4 * 1024 * 1024
    return budget, target_tile


def _pick_block_rows(rows, row_io_bytes, row_f32_bytes, granule, target_tile, budget):
    """Rows per tile: as large as tile-target / VMEM budget allow, granule
    aligned, and split into >= 2 grid blocks when possible (v7x megacore)."""
    # in + out double-buffered (4 io copies) plus ~3 f32 temporaries per row.
    per_row = 4 * row_io_bytes + 3 * row_f32_bytes
    if per_row * granule > budget:
        return None
    max_rows = max(granule, (budget // per_row) // granule * granule)
    block = max(granule, (target_tile // max(1, row_io_bytes)) // granule * granule)
    block = min(block, max_rows)
    block = min(block, _round_up(rows, granule))
    if rows > granule:
        block = min(block, max(granule, _round_up(_cdiv(rows, 2), granule)))
    return block


# --------------------------------- kernels ----------------------------------


def _l2norm_lastdim_kernel(x_ref, o_ref, *, eps_sq):
    # (block_rows, feat) tile; normalize each row.  The ragged last grid block
    # reads padded garbage rows -- safe because rows are independent and the
    # out-of-bounds stores are masked by Pallas.  Do not add cross-row logic.
    x = x_ref[...].astype(jnp.float32)
    ss = jnp.sum(x * x, axis=-1, keepdims=True)
    # F.normalize: x / max(||x||, eps) == x * rsqrt(max(||x||^2, eps^2))
    inv = lax.rsqrt(jnp.maximum(ss, jnp.float32(eps_sq)))
    o_ref[...] = (x * inv).astype(o_ref.dtype)


def _l2norm_packed_kernel(x_ref, o_ref, *, feat, eps_sq):
    # feat < 128: g = 128//feat logical rows packed per 128-lane slab so loads
    # and stores stay lane-dense (no masked vst.msk).  Per-segment sum of
    # squares is a block-diagonal 0/1 matmul on the MXU (a free slot in this
    # memory-bound regime) -- avoids in-kernel reshapes entirely.
    x = x_ref[...].astype(jnp.float32)
    lanes = x.shape[-1]
    seg_i = lax.broadcasted_iota(jnp.int32, (lanes, lanes), 0) // feat
    seg_j = lax.broadcasted_iota(jnp.int32, (lanes, lanes), 1) // feat
    seg_mat = (seg_i == seg_j).astype(jnp.float32)
    ss = jnp.dot(x * x, seg_mat, preferred_element_type=jnp.float32)
    inv = lax.rsqrt(jnp.maximum(ss, jnp.float32(eps_sq)))
    o_ref[...] = (x * inv).astype(o_ref.dtype)


def _l2norm_middim_kernel(x_ref, o_ref, *, eps_sq):
    # (block_lead, norm, trail) tile; reduce the middle (sublane-side) axis so
    # dim != -1 needs no wrapper transpose / extra HBM passes.
    x = x_ref[...].astype(jnp.float32)
    ss = jnp.sum(x * x, axis=1, keepdims=True)
    inv = lax.rsqrt(jnp.maximum(ss, jnp.float32(eps_sq)))
    o_ref[...] = (x * inv).astype(o_ref.dtype)


# --------------------------------- wrapper ----------------------------------


def _jnp_fallback(x, dim, eps):
    xf = x.astype(jnp.float32)
    ss = jnp.sum(xf * xf, axis=dim, keepdims=True)
    inv = lax.rsqrt(jnp.maximum(ss, jnp.float32(eps) * jnp.float32(eps)))
    return (xf * inv).astype(x.dtype)


def l2_normalize(x, dim=-1, eps=1e-12):
    """PyTorch F.normalize(x, p=2, dim=dim, eps=eps) semantics."""
    if x.size == 0:
        return x
    ndim = x.ndim
    dim = dim % ndim
    eps_sq = float(eps) * float(eps)
    itemsize = jnp.dtype(x.dtype).itemsize
    granule = max(8, 32 // itemsize)  # sublane packing: 8 f32 / 16 bf16 / 32 int8
    budget, target_tile = _vmem_budget_and_tile_target()
    cparams = pltpu.CompilerParams(
        dimension_semantics=("parallel",),
        vmem_limit_bytes=int(budget),
    )

    if dim == ndim - 1:
        orig_shape = x.shape
        feat = orig_shape[-1]
        x2d = x.reshape(-1, feat)
        rows = x2d.shape[0]

        packed = (feat < _LANES and _LANES % feat == 0
                  and rows % (_LANES // feat) == 0)
        if packed:
            g = _LANES // feat
            x2d = x2d.reshape(rows // g, _LANES)  # free row-major view
            k_rows, k_feat = rows // g, _LANES
            kernel = functools.partial(_l2norm_packed_kernel, feat=feat, eps_sq=eps_sq)
        else:
            k_rows, k_feat = rows, feat
            kernel = functools.partial(_l2norm_lastdim_kernel, eps_sq=eps_sq)

        block_rows = _pick_block_rows(k_rows, k_feat * itemsize, k_feat * 4,
                                      granule, target_tile, budget)
        if block_rows is None:
            # TODO(synk): rows too wide for a single granule tile need a
            # feature-tiled two-pass (accumulate ss, revisit to normalize);
            # fall back to plain jnp for that rare shape.
            return _jnp_fallback(x, dim, eps)

        num_blocks = _cdiv(k_rows, block_rows)
        out2d = pl.pallas_call(
            kernel,
            out_shape=jax.ShapeDtypeStruct((k_rows, k_feat), x.dtype),
            grid_spec=pltpu.PrefetchScalarGridSpec(
                num_scalar_prefetch=0,
                grid=(num_blocks,),
                in_specs=[pl.BlockSpec((block_rows, k_feat), lambda i: (i, 0))],
                out_specs=pl.BlockSpec((block_rows, k_feat), lambda i: (i, 0)),
            ),
            compiler_params=cparams,
            cost_estimate=pl.CostEstimate(
                flops=3 * k_rows * k_feat,
                transcendentals=rows,
                bytes_accessed=2 * k_rows * k_feat * itemsize,
            ),
        )(x2d)
        if packed:
            out2d = out2d.reshape(rows, feat)
        return out2d.reshape(orig_shape)

    # dim != -1: keep the lane axis dense and reduce the middle axis in kernel.
    lead = 1
    for s in x.shape[:dim]:
        lead *= s
    norm = x.shape[dim]
    trail = 1
    for s in x.shape[dim + 1:]:
        trail *= s
    x3d = x.reshape(lead, norm, trail)

    slab_io = norm * trail * itemsize
    slab_f32 = norm * trail * 4
    per_lead = 4 * slab_io + 3 * slab_f32
    if per_lead > budget:
        # TODO(synk): a huge (norm, trail) slab would need a tiled two-pass
        # accumulator kernel; fall back to plain jnp for that rare shape.
        return _jnp_fallback(x, dim, eps)

    block_lead = max(1, target_tile // max(1, slab_io))
    block_lead = min(block_lead, budget // per_lead, lead)
    if lead > 1:
        block_lead = min(block_lead, max(1, _cdiv(lead, 2)))  # >=2 blocks (v7x)
    num_blocks = _cdiv(lead, block_lead)

    out3d = pl.pallas_call(
        functools.partial(_l2norm_middim_kernel, eps_sq=eps_sq),
        out_shape=jax.ShapeDtypeStruct((lead, norm, trail), x.dtype),
        grid_spec=pltpu.PrefetchScalarGridSpec(
            num_scalar_prefetch=0,
            grid=(num_blocks,),
            in_specs=[pl.BlockSpec((block_lead, norm, trail), lambda i: (i, 0, 0))],
            out_specs=pl.BlockSpec((block_lead, norm, trail), lambda i: (i, 0, 0)),
        ),
        compiler_params=cparams,
        cost_estimate=pl.CostEstimate(
            flops=3 * lead * norm * trail,
            transcendentals=lead * trail,
            bytes_accessed=2 * lead * norm * trail * itemsize,
        ),
    )(x3d)
    return out3d.reshape(x.shape)


if __name__ == "__main__":
    key = jax.random.PRNGKey(0)
    k1, k2, k3, k4, k5 = jax.random.split(key, 5)

    def _ref(x, dim=-1, eps=1e-12):
        xf = x.astype(jnp.float32)
        nrm = jnp.sqrt(jnp.sum(xf * xf, axis=dim, keepdims=True))
        return (xf / jnp.maximum(nrm, eps)).astype(x.dtype)

    def _check(out, ref, atol=1e-5):
        assert out.shape == ref.shape and out.dtype == ref.dtype
        assert jnp.allclose(out.astype(jnp.float32), ref.astype(jnp.float32),
                            atol=atol, rtol=atol)

    # 1) Lane-dense feature dim (>=128): the main streaming path.
    x1 = jax.random.normal(k1, (2, 8, 128), dtype=jnp.float32)
    _check(jax.block_until_ready(l2_normalize(x1)), _ref(x1))

    # 2) feat=32, rows=15 (not divisible by 128//feat): masked fallback path.
    x2 = jax.random.normal(k2, (3, 5, 32), dtype=jnp.float32)
    _check(jax.block_until_ready(l2_normalize(x2)), _ref(x2))

    # 3) feat=32, rows=32: lane-dense packed path (4 rows per 128-lane slab).
    x3 = jax.random.normal(k3, (4, 8, 32), dtype=jnp.float32)
    _check(jax.block_until_ready(l2_normalize(x3)), _ref(x3))

    # 4) dim != -1: in-kernel mid-axis reduction (no wrapper transpose).
    x4 = jax.random.normal(k4, (2, 4, 16, 16), dtype=jnp.float32)
    _check(jax.block_until_ready(l2_normalize(x4, dim=1)), _ref(x4, dim=1))

    # 5) bf16 input with in-kernel f32 accumulation.
    x5 = jax.random.normal(k5, (2, 8, 256), dtype=jnp.bfloat16)
    _check(jax.block_until_ready(l2_normalize(x5)), _ref(x5), atol=2e-2)

    print("KERNEL_OK")
</pallas_src>

<mosaic_0001>
module attributes {stable_mosaic.version = 11 : i64} {
  func.func @_l2norm_lastdim_kernel(%arg0: i32, %arg1: memref<8x128xf32, #tpu.memory_space<vmem>>, %arg2: memref<8x128xf32, #tpu.memory_space<vmem>>) attributes {dimension_semantics = [#tpu.dimension_semantics<parallel>], iteration_bounds = array<i64: 2>, scalar_prefetch = 0 : i64, scratch_operands = 0 : i64, tpu.core_type = #tpu.core_type<tc>, window_params = [{transform_indices = @transform_0, window_bounds = array<i64: 8, 128>}, {transform_indices = @transform_1, window_bounds = array<i64: 8, 128>}]} {
    %c0 = arith.constant 0 : index
    %c0_0 = arith.constant 0 : index
    %0 = vector.load %arg1[%c0, %c0_0] : memref<8x128xf32, #tpu.memory_space<vmem>>, vector<8x128xf32>
    %1 = arith.mulf %0, %0 : vector<8x128xf32>
    %cst = arith.constant dense<0.000000e+00> : vector<8xf32>
    %2 = vector.multi_reduction <add>, %1, %cst [1] : vector<8x128xf32> to vector<8xf32>
    %3 = vector.shape_cast %2 : vector<8xf32> to vector<8x1xf32>
    %cst_1 = arith.constant 1.000000e-24 : f32
    %4 = vector.broadcast %cst_1 : f32 to vector<8x1xf32>
    %5 = arith.maximumf %3, %4 : vector<8x1xf32>
    %6 = math.rsqrt %5 : vector<8x1xf32>
    %7 = vector.broadcast %6 : vector<8x1xf32> to vector<8x128xf32>
    %8 = arith.mulf %0, %7 : vector<8x128xf32>
    %c0_2 = arith.constant 0 : index
    %c0_3 = arith.constant 0 : index
    %9 = vector.load %arg2[%c0_2, %c0_3] : memref<8x128xf32, #tpu.memory_space<vmem>>, vector<8x128xf32>
    tpu.vector_store %arg2[%c0_2, %c0_3], %8 {strides = array<i32>} : memref<8x128xf32, #tpu.memory_space<vmem>>, vector<8x128xf32>,
    return
  }
  func.func @transform_0(%arg0: i32) -> (i32, i32) {
    %c0_i32 = arith.constant 0 : i32
    %c0_i32_0 = arith.constant 0 : i32
    return %arg0, %c0_i32 : i32, i32
  }
  func.func @transform_1(%arg0: i32) -> (i32, i32) {
    %c0_i32 = arith.constant 0 : i32
    %c0_i32_0 = arith.constant 0 : i32
    return %arg0, %c0_i32 : i32, i32
  }
}

</mosaic_0001>

<bundles_post_ra>
// kernel: tpu_custom_call.1
= control target key start
LH: loop header
LB: loop body
LE: loop exit
PB: predicated region body
PF: predicated region fallthrough
CT: control target
= control target key end

     0   :  { %6 = vsyncpa [#allocation3], 0  ;;  %s555_s0 = inlined_call_operand.hbm [shape: f32[16,128], index: 0, kind: input, shape index: {}]   ;;  %s556_s1 = inlined_call_operand.hbm [shape: f32[16,128], index: 1, kind: output, shape index: {}]  }
   0x1   :  { %8 = vsyncpa [#allocation3 + $0x1], 0 }
   0x2   :  { %9 = vsyncpa [#allocation4], 0 }
   0x3   :  { %11 = vsyncpa [#allocation4 + $0x1], 0  ;;  %s394_s6 = smov 0   ;;  %s396_s7 = smov 0  }
   0x4   :  { %s398_s8 = smov 0   ;;  %s400_s9 = smov 0  }
   0x5 LB: > { %s415_s10 = sadd.s32 4294967295, %s380_s9   ;;  %s224_s11 = sadd.s32 4294967294, %s380_s9   ;;  %s380_s9 = sphi %s400_s9, %s571_s9   ;;  %s376_s8 = sphi %s398_s8, %s570_s8   ;;  %s372_s7 = sphi %s396_s7, %s569_s7   ;;  %s368_s6 = sphi %s394_s6, %s568_s6  }
   0x6   : > { %s419_s12 = sadd.s32 1, %s380_s9   ;;  %s24_s13 = sadd.s32 1, %s376_s8 }
   0x7   : > { %s21_s14 = ssub.s32 %s380_s9, %s419_s12  ;;  %p31_p0 = scmp.ne.s32.totalorder %s376_s8, %s372_s7 }
   0x8   : > { %p22_p1 = scmp.eq.s32.totalorder %s21_s14, 0  ;;  %p32_p2 = scmp.eq.s32.totalorder %s380_s9, 0 }
   0x9   : > { %p37_p3 = scmp.ne.s32.totalorder %s372_s7, %s368_s6  ;;  %p38_p4 = scmp.eq.s32.totalorder %s415_s10, 0 }
   0xa   : > { %s431_s15 = scalar_select %p22_p1, %s376_s8, %s24_s13  }
   0xb   : > { %p433_p5 = por %p32_p2, %p31_p0  ;;  %p437_p6 = por %p38_p4, %p37_p3 }
   0xc   : > { %p61_p7 = scmp.eq.s32.totalorder %s415_s10, 1  ;;  %p67_p8 = scmp.eq.s32.totalorder %s224_s11, 1 }
   0xd   : > { %p248_p10 = scmp.lt.s32.totalorder %s380_s9, 2  ;;  %s87_s20 = sand.u32 1, %s376_s8  }
   0xe   : > { %p444_p11 = por %p61_p7, %p31_p0  ;;  %p448_p12 = por %p67_p8, %p37_p3 }
   0xf   : > { %s228_s21 = sshll.u32 %s380_s9, 7  ;;  %s227_s22 = sshll.u32 %s87_s20, 3 }
  0x10   : > { %s560_s18 = scalar_select %p444_p11, 1, 0 }
  0x11   : > { %s561_s19 = scalar_select %p448_p12, 1, 0 }
  0x12   : > { %s457_s25 = scalar_lea.hbm %s555_s0, %s228_s21  ;;  %s91_s26 = scalar_lea.vmem [#allocation2], %s227_s22 }
  0x13   : > { %s98_s27 = sshll.u32 %s91_s26, 4  ;;  %p461_p13 = pnand %p248_p10, %p433_p5  ;;  %s465_s27 = int_to_ptr.vmem [resolvable:$true] %s98_s27 }
  0x14   : > { %s88_s29 = scalar_lea.sflag [#allocation3], %s87_s20  ;;  %s284_s30 = scalar_lea.hbm %s457_s25, 128 }
  0x15   : > { %p285_p2 = scmp.ne.s32.totalorder %s457_s25, %s284_s30  ;;  %p286_p3 = pneg %p461_p13 }
  0x16   : > { %s289_s4 = scalar_lea.hbm %s555_s0, 256  ;;  %p290_p5 = scmp.lt.u32.totalorder %s457_s25, %s555_s0 }
  0x17   : > { %p287_p4 = pnand %p286_p3, %p285_p2  ;;  %p291_p8 = scmp.lt.u32.totalorder %s289_s4, %s284_s30 }
  0x18   : > { %p293_p9 = scmp.lt.u32.totalorder %s284_s30, %s457_s25 }
  0x19   : > { %p288_p7 = pneg %p287_p4  ;;  %p292_p10 = por %p291_p8, %p290_p5 }
  0x1b   : > { %p294_p0 = por %p293_p9, %p292_p10 }
  0x1d   : > { %p295_p1 = pnand %p294_p0, %p288_p7 }
  0x1f   : > { %298 = shalt.err (!%p295_p1)
}
  0x20   : > { %s299_s13 = scalar_lea.vmem %s465_s27, 128  ;;  %s382_s14 = smov [#allocation2]  }
  0x21   : > { %p300_p2 = scmp.ne.s32.totalorder %s465_s27, %s299_s13  ;;  %s304_s16 = sshll.u32 %s382_s14, 4  ;;  %s305_s16 = int_to_ptr.vmem [resolvable:$false] %s304_s16 }
  0x22   : > { %s306_s20 = scalar_lea.vmem %s305_s16, 256  ;;  %p307_p11 = scmp.lt.s32.totalorder %s465_s27, %s305_s16 }
  0x23   : > { %p302_p4 = pnand %p300_p2, %p286_p3  ;;  %p308_p5 = scmp.lt.s32.totalorder %s306_s20, %s299_s13 }
  0x25   : > { %p303_p12 = pneg %p302_p4  ;;  %p309_p8 = por %p308_p5, %p307_p11 }
  0x27   : > { %p310_p9 = pnand %p309_p8, %p303_p12 }
  0x29   : > { %313 = shalt.err (!%p310_p9)
}
  0x2a   : > { %243 = dma.hbm_to_vmem [thread:$0]  (!%p461_p13), %s457_s25, 128, %s465_s27, %s88_s29  }
  0x2b   : > { %p563_p0 = scmp.lt.s32.totalorder %s380_s9, 3  ;;  %p564_p1 = scmp.ge.s32.totalorder %s380_s9, 1 }
  0x2d   : > { %p104_p3 = pnand %p564_p1, %p563_p0 }
  0x2e   : > { %s499_s21 = sand.u32 (!%p104_p3), 1, %s372_s7  }
  0x2f   : > { %107 = sbr.rel (%p104_p3) target bundleno = 229 (0xe5), region = 24  ;;  %s230_s22 = sshll.u32 (!%p104_p3), %s499_s21, 3 }
  0x30   : > { %s110_s23 = scalar_lea.sflag (!%p104_p3), [#allocation3], %s499_s21  ;;  %s113_s24 = scalar_lea.vmem (!%p104_p3), [#allocation2], %s230_s22 }
  0x36   : > { %359 = dma.done.wait (%p437_p6), %s110_s23, 128  }
  0x37   : > { %361 = vsyncadd (%p437_p6), %s110_s23, 4294967168  ;;  %v132_v0 = vld [vmem:[%s113_s24] sm:$0xff]  ;;  %s233_s25 = sshll.u32 %s415_s10, 7  ;;  %s131_s26 = scalar_lea.vmem [#allocation5], %s230_s22 }
  0x38   : > { %v133_v1 = vmul.f32 %v132_v0, %v132_v0  ;;  %s154_s27 = sshll.u32 %s131_s26, 4  ;;  %s511_s30 = scalar_lea.hbm %s556_s1, %s233_s25  ;;  %s513_s27 = int_to_ptr.vmem [resolvable:$true] %s154_s27 }
  0x39   : > { %s141_s17 = scalar_lea.sflag [#allocation4], %s499_s21  ;;  %s314_s2 = scalar_lea.vmem %s513_s27, 128 }
  0x3a   : > { %134 = vadd.xlane.f32.xlu0 %v133_v1  ;;  %p315_p6 = scmp.ne.s32.totalorder %s513_s27, %s314_s2  ;;  %p565_p11 = scmp.ne.s32.totalorder %s560_s18, 0 }
  0x3b   : > { %s383_s10 = smov [#allocation5]  }
  0x3c   : > { %p316_p12 = pnand %p315_p6, %p565_p11  ;;  %s318_s3 = sshll.u32 %s383_s10, 4  ;;  %s319_s3 = int_to_ptr.vmem [resolvable:$false] %s318_s3 }
  0x3d   : > { %s320_s4 = scalar_lea.vmem %s319_s3, 256  ;;  %p321_p7 = scmp.lt.s32.totalorder %s513_s27, %s319_s3 }
  0x3e   : > { %p317_p13 = pneg %p316_p12  ;;  %p322_p10 = scmp.lt.s32.totalorder %s320_s4, %s314_s2 }
  0x40   : > { %p323_p2 = por %p322_p10, %p321_p7 }
  0x42   : > { %p324_p4 = pnand %p323_p2, %p317_p13 }
  0xc7   : > { %v135_v2 = vpop.xlane.xlu0 %134 }
  0xc8   : > { %v136_v3 = vmax.f32 %v135_v2, 1e-24 }
  0xca   : > { %282 = vrsqrt.f32 %v136_v3 }
  0xd4   : > { %v283_v4 = vpop.eup %282 }
  0xd5   : > { %v138_v5 = vmul.f32 %v283_v4, %v132_v0 }
  0xd7   : > { %139 = vst [vmem:[%s131_s26] sm:$0xff] %v138_v5 }
  0xd8   : > { %327 = shalt.err (!%p324_p4)
}
  0xd9   : > { %s328_s5 = scalar_lea.hbm %s511_s30, 128  ;;  %s332_s14 = scalar_lea.hbm %s556_s1, 256 }
  0xda   : > { %p329_p5 = scmp.ne.s32.totalorder %s511_s30, %s328_s5  ;;  %p333_p0 = scmp.lt.u32.totalorder %s511_s30, %s556_s1 }
  0xdb   : > { %p334_p1 = scmp.lt.u32.totalorder %s332_s14, %s328_s5  ;;  %p336_p6 = scmp.lt.u32.totalorder %s328_s5, %s511_s30 }
  0xdc   : > { %p330_p8 = pnand %p329_p5, %p565_p11 }
  0xdd   : > { %p335_p3 = por %p334_p1, %p333_p0 }
  0xde   : > { %p331_p9 = pneg %p330_p8 }
  0xdf   : > { %p337_p12 = por %p336_p6, %p335_p3 }
  0xe1   : > { %p338_p13 = pnand %p337_p12, %p331_p9 }
  0xe3   : > { %341 = shalt.err (!%p338_p13)
}
  0xe4   : > { %238 = dma.vmem_to_hbm [thread:$0]  (%p565_p11), %s513_s27, 128, %s511_s30, %s141_s17  }
  0xe5 PF: > { %s166_s21 = sand.u32 1, %s368_s6   ;;  %p566_p7 = scmp.ne.s32.totalorder %s561_s19, 0 }
  0xe6   : > { %p567_p10 = scmp.ge.s32.totalorder %s380_s9, 2  ;;  %s167_s22 = scalar_lea.sflag [#allocation4], %s166_s21 }
  0xe8   : > { %p245_p2 = pnand %p567_p10, %p566_p7 }
  0xea   : > { %363 = dma.done.wait (!%p245_p2), %s167_s22, 128  }
  0xeb   : > { %365 = vsyncadd (!%p245_p2), %s167_s22, 4294967168  ;;  %p14_p4 = scmp.ge.s32.totalorder %s419_s12, 4   ;;  %s568_s6 = smov %s372_s7 }
  0xec   : > { %s569_s7 = smov %s376_s8  ;;  %s570_s8 = smov %s431_s15 }
  0xed   : > { %s571_s9 = smov %s419_s12  ;;  %16 = sbr.rel (!%p14_p4) target bundleno = 5 (0x5), region = 69 }
  0xf4   :  { %172 = vsyncpa [#allocation3], 1 }
  0xf5   :  { %174 = vsyncpa [#allocation3 + $0x1], 1 }
  0xf6   :  { %175 = vsyncpa [#allocation4], 1 }
  0xf7   :  { %177 = vsyncpa [#allocation4 + $0x1], 1 }

</bundles_post_ra>
